<compile_context>
chip_gen: v6e
topology: v6e:2x2x1
jax: 0.10.0
libtpu: 0.0.40
codegen_flags: <defaults>
</compile_context>

<pallas_src>
import math
from functools import partial

import jax
import jax.numpy as jnp
from jax.experimental import pallas as pl
from jax.experimental.pallas import tpu as pltpu

# Finite "minus infinity": avoids (-inf) - (-inf) = NaN edge cases in the
# online softmax while still flushing masked probabilities to exactly 0.
_NEG_BIG = -1e30


# ---------------------------------------------------------------------------
# Kernel 1: fused QKV projection (single lane-dense matmul), head-major
# outputs, K pre-transposed, scale folded into Q.
# ---------------------------------------------------------------------------
def _qkv_proj_kernel(x_ref, w_ref, q_ref, k_ref, v_ref, *, n_heads, d_out,
                     scale):
    # x_ref : (1, tt, d_in)
    # w_ref : (d_in, 3*d_out)   -> [Wq | Wk | Wv]
    # q_ref : (1, H, tt, hd)
    # k_ref : (1, H, hd, tt)    (pre-transposed K: lane-dense store, natural
    #                            rhs layout for QK^T)
    # v_ref : (1, H, tt, hd)
    x = x_ref[0]                                           # (tt, d_in)
    tt = x.shape[0]
    hd = d_out // n_heads

    # One big MXU matmul with 3*d_out output lanes; f32 accumulation.
    qkv = jnp.dot(x, w_ref[...], preferred_element_type=jnp.float32)

    q = qkv[:, :d_out] * scale                             # fold 1/sqrt(hd)
    k = qkv[:, d_out:2 * d_out]
    v = qkv[:, 2 * d_out:]

    # One-time relayout per tile (XLU slot), hidden behind the matmul.
    q_ref[0] = jnp.transpose(q.reshape(tt, n_heads, hd), (1, 0, 2)).astype(q_ref.dtype)
    k_ref[0] = k.T.reshape(n_heads, hd, tt).astype(k_ref.dtype)
    v_ref[0] = jnp.transpose(v.reshape(tt, n_heads, hd), (1, 0, 2)).astype(v_ref.dtype)


# ---------------------------------------------------------------------------
# Kernel 2: flash attention (online softmax) + fused output projection.
# ---------------------------------------------------------------------------
def _flash_attn_kernel(q_ref, k_ref, v_ref, wo_ref, bo_ref, o_ref,
                       m_sc, l_sc, acc_sc, *, tq, tkv, causal):
    # q_ref  : (1, H, tq,  hd)   (already scaled by 1/sqrt(hd))
    # k_ref  : (1, H, hd,  tkv)  (pre-transposed)
    # v_ref  : (1, H, tkv, hd)
    # wo_ref : (d_out, d_out)
    # bo_ref : (1, d_out)
    # o_ref  : (1, tq, d_out)
    # m_sc   : (H, tq, 1)  f32   running max
    # l_sc   : (H, tq, 1)  f32   running denominator
    # acc_sc : (H, tq, hd) f32   running unnormalized context
    qi = pl.program_id(1)
    ki = pl.program_id(2)
    nk = pl.num_programs(2)

    @pl.when(ki == 0)
    def _init():
        m_sc[...] = jnp.full_like(m_sc, _NEG_BIG)
        l_sc[...] = jnp.zeros_like(l_sc)
        acc_sc[...] = jnp.zeros_like(acc_sc)

    def _tile_update(apply_mask):
        q = q_ref[0]                                        # (H, tq,  hd)
        k = k_ref[0]                                        # (H, hd,  tkv)
        v = v_ref[0]                                        # (H, tkv, hd)

        # Natural MXU form: lhs (tq, hd) x rhs (hd, tkv), batched over heads.
        s = jnp.einsum('hqd,hdk->hqk', q, k,
                       preferred_element_type=jnp.float32)  # (H, tq, tkv)
        if apply_mask:
            row = qi * tq + jax.lax.broadcasted_iota(jnp.int32, (1, tq, tkv), 1)
            col = ki * tkv + jax.lax.broadcasted_iota(jnp.int32, (1, tq, tkv), 2)
            s = jnp.where(col > row, _NEG_BIG, s)

        m_prev = m_sc[...]
        m_new = jnp.maximum(m_prev, jnp.max(s, axis=-1, keepdims=True))
        alpha = jnp.exp(m_prev - m_new)
        p = jnp.exp(s - m_new)

        l_sc[...] = alpha * l_sc[...] + jnp.sum(p, axis=-1, keepdims=True)
        acc_sc[...] = alpha * acc_sc[...] + jnp.einsum(
            'hqk,hkd->hqd', p.astype(v.dtype), v,
            preferred_element_type=jnp.float32)
        m_sc[...] = m_new

    if causal:
        # kv tile contributes iff its first column <= last query row.
        has_work = ki * tkv <= qi * tq + (tq - 1)
        # mask needed iff the tile crosses the diagonal.
        crosses = ki * tkv + (tkv - 1) > qi * tq

        @pl.when(jnp.logical_and(has_work, jnp.logical_not(crosses)))
        def _full_tile():
            _tile_update(apply_mask=False)

        @pl.when(jnp.logical_and(has_work, crosses))
        def _diag_tile():
            _tile_update(apply_mask=True)
    else:
        _tile_update(apply_mask=False)

    @pl.when(ki == nk - 1)
    def _finalize():
        n_heads, tq_, hd = acc_sc.shape
        inv_l = pl.reciprocal(l_sc[...], approx=False)      # exact; once/q-tile
        ctx = acc_sc[...] * inv_l                           # (H, tq, hd) f32
        # Flatten to (tq, d_out) (XLU relayout, once per q tile) and do a
        # single full-contraction-depth output projection on the MXU.
        ctx = jnp.transpose(ctx, (1, 0, 2)).reshape(tq_, n_heads * hd)
        out = jnp.dot(ctx.astype(wo_ref.dtype), wo_ref[...],
                      preferred_element_type=jnp.float32)
        out = out + bo_ref[...].astype(jnp.float32)
        o_ref[0] = out.astype(o_ref.dtype)


# ---------------------------------------------------------------------------
# Wrapper
# ---------------------------------------------------------------------------
def _fit_tile(n, target):
    """Largest 128-multiple divisor of n that is <= target, else n itself.

    128-alignment keeps lane-minor tile dims dense and bf16 sublane packing
    happy; if no such divisor exists we fall back to the full length (correct,
    possibly VMEM-heavy for awkward sequence lengths).
    """
    if n <= target:
        return n
    t = (target // 128) * 128
    while t >= 128:
        if n % t == 0:
            return t
        t -= 128
    return n


def mhsa_forward(x, wq, wk, wv, wo, bo, *, n_heads, causal=True,
                 q_tile=256, kv_tile=256, row_tile=256):
    B, T, d_in = x.shape
    d_out = wq.shape[1]
    assert d_out % n_heads == 0
    hd = d_out // n_heads
    scale = 1.0 / math.sqrt(hd)
    itemsize = x.dtype.itemsize

    # Fused QKV weight (one-time, cheap concat outside the kernels).
    w_qkv = jnp.concatenate([wq, wk, wv], axis=1)     # (d_in, 3*d_out)
    bo2 = bo.reshape(1, d_out)

    tt = _fit_tile(T, row_tile)
    tq = _fit_tile(T, q_tile)
    tkv = _fit_tile(T, kv_tile)

    # 48 MiB: plenty for 256-tiles, still below v7x's 64 MiB/TC physical VMEM.
    vmem_limit = 48 * 1024 * 1024

    # ---- kernel 1: fused QKV projection ----
    q_h, k_t, v_h = pl.pallas_call(
        partial(_qkv_proj_kernel, n_heads=n_heads, d_out=d_out, scale=scale),
        out_shape=(
            jax.ShapeDtypeStruct((B, n_heads, T, hd), x.dtype),   # Q
            jax.ShapeDtypeStruct((B, n_heads, hd, T), x.dtype),   # K^T
            jax.ShapeDtypeStruct((B, n_heads, T, hd), x.dtype),   # V
        ),
        grid_spec=pltpu.PrefetchScalarGridSpec(
            num_scalar_prefetch=0,
            grid=(B, T // tt),
            in_specs=[
                pl.BlockSpec((1, tt, d_in), lambda b, t: (b, t, 0)),
                pl.BlockSpec((d_in, 3 * d_out), lambda b, t: (0, 0)),
            ],
            out_specs=(
                pl.BlockSpec((1, n_heads, tt, hd), lambda b, t: (b, 0, t, 0)),
                pl.BlockSpec((1, n_heads, hd, tt), lambda b, t: (b, 0, 0, t)),
                pl.BlockSpec((1, n_heads, tt, hd), lambda b, t: (b, 0, t, 0)),
            ),
        ),
        compiler_params=pltpu.CompilerParams(
            dimension_semantics=("parallel", "parallel"),
            vmem_limit_bytes=vmem_limit),
        cost_estimate=pl.CostEstimate(
            flops=int(2 * B * T * d_in * 3 * d_out),
            transcendentals=0,
            bytes_accessed=int((B * T * d_in + 3 * d_in * d_out
                                + 3 * B * T * d_out) * itemsize)),
    )(x, w_qkv)

    # ---- kernel 2: flash attention + fused output projection ----
    nq, nk = T // tq, T // tkv

    if causal:
        # Fully-masked kv tiles alias the last tile that has work => Pallas
        # re-uses the resident block (no new DMA); compute is skipped by
        # pl.when inside the kernel.
        def k_map(b, i, j):
            return (b, 0, 0, jnp.minimum(j, (i * tq + tq - 1) // tkv))

        def v_map(b, i, j):
            return (b, 0, jnp.minimum(j, (i * tq + tq - 1) // tkv), 0)
    else:
        def k_map(b, i, j):
            return (b, 0, 0, j)

        def v_map(b, i, j):
            return (b, 0, j, 0)

    attn_flops = 4 * B * T * T * d_out
    if causal:
        attn_flops //= 2

    out = pl.pallas_call(
        partial(_flash_attn_kernel, tq=tq, tkv=tkv, causal=causal),
        out_shape=jax.ShapeDtypeStruct((B, T, d_out), x.dtype),
        grid_spec=pltpu.PrefetchScalarGridSpec(
            num_scalar_prefetch=0,
            grid=(B, nq, nk),
            in_specs=[
                pl.BlockSpec((1, n_heads, tq, hd), lambda b, i, j: (b, 0, i, 0)),
                pl.BlockSpec((1, n_heads, hd, tkv), k_map),
                pl.BlockSpec((1, n_heads, tkv, hd), v_map),
                pl.BlockSpec((d_out, d_out), lambda b, i, j: (0, 0)),
                pl.BlockSpec((1, d_out), lambda b, i, j: (0, 0)),
            ],
            out_specs=pl.BlockSpec((1, tq, d_out), lambda b, i, j: (b, i, 0)),
            scratch_shapes=[
                pltpu.VMEM((n_heads, tq, 1), jnp.float32),    # running max
                pltpu.VMEM((n_heads, tq, 1), jnp.float32),    # running denom
                pltpu.VMEM((n_heads, tq, hd), jnp.float32),   # running context
            ],
        ),
        compiler_params=pltpu.CompilerParams(
            dimension_semantics=("parallel", "parallel", "arbitrary"),
            vmem_limit_bytes=vmem_limit),
        cost_estimate=pl.CostEstimate(
            flops=int(attn_flops + 2 * B * T * d_out * d_out),
            transcendentals=int(B * n_heads * T * T // (2 if causal else 1)),
            bytes_accessed=int((4 * B * T * d_out + d_out * d_out + d_out)
                               * itemsize)),
    )(q_h, k_t, v_h, wo, bo2)
    return out


# ---------------------------------------------------------------------------
# Pure-JAX reference mirroring the torch forward (eval mode)
# ---------------------------------------------------------------------------
def mhsa_reference(x, wq, wk, wv, wo, bo, *, n_heads, causal=True):
    B, T, d_in = x.shape
    d_out = wq.shape[1]
    hd = d_out // n_heads
    q = (x @ wq).reshape(B, T, n_heads, hd).transpose(0, 2, 1, 3)
    k = (x @ wk).reshape(B, T, n_heads, hd).transpose(0, 2, 1, 3)
    v = (x @ wv).reshape(B, T, n_heads, hd).transpose(0, 2, 1, 3)
    scores = jnp.einsum("bhqd,bhkd->bhqk", q, k)
    if causal:
        mask = jnp.triu(jnp.ones((T, T), bool), k=1)
        scores = jnp.where(mask, -jnp.inf, scores)
    attn = jax.nn.softmax(scores / math.sqrt(hd), axis=-1)
    ctx = jnp.einsum("bhqk,bhkd->bhqd", attn, v)
    ctx = ctx.transpose(0, 2, 1, 3).reshape(B, T, d_out)
    return ctx @ wo + bo


if __name__ == "__main__":
    # Small shapes consistent with the module: batch=2, seq=8, hidden=32.
    B, T, D_IN, D_OUT, N_HEADS = 2, 8, 32, 32, 2

    key = jax.random.PRNGKey(0)
    kx, kq, kk, kv, ko, kb = jax.random.split(key, 6)

    x = jax.random.normal(kx, (B, T, D_IN), dtype=jnp.float32)
    wq = jax.random.normal(kq, (D_IN, D_OUT), dtype=jnp.float32) * 0.1
    wk = jax.random.normal(kk, (D_IN, D_OUT), dtype=jnp.float32) * 0.1
    wv = jax.random.normal(kv, (D_IN, D_OUT), dtype=jnp.float32) * 0.1
    wo = jax.random.normal(ko, (D_OUT, D_OUT), dtype=jnp.float32) * 0.1
    bo = jax.random.normal(kb, (D_OUT,), dtype=jnp.float32) * 0.1

    out = mhsa_forward(x, wq, wk, wv, wo, bo, n_heads=N_HEADS, causal=True)
    out = jax.block_until_ready(out)

    ref = mhsa_reference(x, wq, wk, wv, wo, bo, n_heads=N_HEADS, causal=True)
    assert out.shape == (B, T, D_OUT)
    # Exact reciprocal at finalize lets us tighten the tolerance vs. the
    # previous version (remaining slack covers MXU accumulation-order diffs).
    assert jnp.allclose(out, ref, atol=1e-2, rtol=1e-2), "mismatch vs reference"

    print("KERNEL_OK")
</pallas_src>

<mosaic_0001>
module attributes {stable_mosaic.version = 11 : i64} {
  func.func @_qkv_proj_kernel(%arg0: i32, %arg1: i32, %arg2: memref<1x8x32xf32, #tpu.memory_space<vmem>>, %arg3: memref<32x96xf32, #tpu.memory_space<vmem>>, %arg4: memref<1x2x8x16xf32, #tpu.memory_space<vmem>>, %arg5: memref<1x2x16x8xf32, #tpu.memory_space<vmem>>, %arg6: memref<1x2x8x16xf32, #tpu.memory_space<vmem>>) attributes {dimension_semantics = [#tpu.dimension_semantics<parallel>, #tpu.dimension_semantics<parallel>], iteration_bounds = array<i64: 2, 1>, scalar_prefetch = 0 : i64, scratch_operands = 0 : i64, tpu.core_type = #tpu.core_type<tc>, window_params = [{transform_indices = @transform_0, window_bounds = array<i64: 1, 8, 32>}, {pipeline_mode = #tpu.pipeline_mode<synchronous>, transform_indices = @transform_1, window_bounds = array<i64: 32, 96>}, {transform_indices = @transform_2, window_bounds = array<i64: 1, 2, 8, 16>}, {transform_indices = @transform_3, window_bounds = array<i64: 1, 2, 16, 8>}, {transform_indices = @transform_4, window_bounds = array<i64: 1, 2, 8, 16>}]} {
    %c0 = arith.constant 0 : index
    %c0_0 = arith.constant 0 : index
    %c0_1 = arith.constant 0 : index
    %0 = vector.load %arg2[%c0, %c0_0, %c0_1] : memref<1x8x32xf32, #tpu.memory_space<vmem>>, vector<1x8x32xf32>
    %1 = vector.shape_cast %0 : vector<1x8x32xf32> to vector<8x32xf32>
    %c0_2 = arith.constant 0 : index
    %c0_3 = arith.constant 0 : index
    %2 = vector.load %arg3[%c0_2, %c0_3] : memref<32x96xf32, #tpu.memory_space<vmem>>, vector<32x96xf32>
    %cst = arith.constant dense<0.000000e+00> : vector<8x96xf32>
    %3 = tpu.matmul %1, %2, %cst {dimension_numbers = #tpu.dot_dimension_numbers<[1], [0], [0], [1], [0, 0, 1, 1], [], []>} : vector<8x32xf32>, vector<32x96xf32>, vector<8x96xf32> -> vector<8x96xf32>
    %4 = vector.extract_strided_slice %3 {offsets = [0, 0], sizes = [8, 32], strides = [1, 1]} : vector<8x96xf32> to vector<8x32xf32>
    %cst_4 = arith.constant 2.500000e-01 : f32
    %5 = vector.broadcast %cst_4 : f32 to vector<8x32xf32>
    %6 = arith.mulf %4, %5 : vector<8x32xf32>
    %7 = vector.extract_strided_slice %3 {offsets = [0, 32], sizes = [8, 32], strides = [1, 1]} : vector<8x96xf32> to vector<8x32xf32>
    %8 = vector.extract_strided_slice %3 {offsets = [0, 64], sizes = [8, 32], strides = [1, 1]} : vector<8x96xf32> to vector<8x32xf32>
    %9 = vector.shape_cast %6 : vector<8x32xf32> to vector<8x2x16xf32>
    %10 = tpu.transpose %9, [1, 0, 2] : vector<8x2x16xf32> -> vector<2x8x16xf32>
    %c0_5 = arith.constant 0 : index
    %c0_6 = arith.constant 0 : index
    %c0_7 = arith.constant 0 : index
    %c0_8 = arith.constant 0 : index
    %11 = vector.load %arg4[%c0_5, %c0_6, %c0_7, %c0_8] : memref<1x2x8x16xf32, #tpu.memory_space<vmem>>, vector<1x2x8x16xf32>
    %12 = vector.shape_cast %11 : vector<1x2x8x16xf32> to vector<2x8x16xf32>
    %13 = vector.shape_cast %10 : vector<2x8x16xf32> to vector<1x2x8x16xf32>
    tpu.vector_store %arg4[%c0_5, %c0_6, %c0_7, %c0_8], %13 {strides = array<i32>} : memref<1x2x8x16xf32, #tpu.memory_space<vmem>>, vector<1x2x8x16xf32>,
    %14 = tpu.transpose %7, [1, 0] : vector<8x32xf32> -> vector<32x8xf32>
    %15 = vector.shape_cast %14 : vector<32x8xf32> to vector<2x16x8xf32>
    %c0_9 = arith.constant 0 : index
    %c0_10 = arith.constant 0 : index
    %c0_11 = arith.constant 0 : index
    %c0_12 = arith.constant 0 : index
    %16 = vector.load %arg5[%c0_9, %c0_10, %c0_11, %c0_12] : memref<1x2x16x8xf32, #tpu.memory_space<vmem>>, vector<1x2x16x8xf32>
    %17 = vector.shape_cast %16 : vector<1x2x16x8xf32> to vector<2x16x8xf32>
    %18 = vector.shape_cast %15 : vector<2x16x8xf32> to vector<1x2x16x8xf32>
    tpu.vector_store %arg5[%c0_9, %c0_10, %c0_11, %c0_12], %18 {strides = array<i32>} : memref<1x2x16x8xf32, #tpu.memory_space<vmem>>, vector<1x2x16x8xf32>,
    %19 = vector.shape_cast %8 : vector<8x32xf32> to vector<8x2x16xf32>
    %20 = tpu.transpose %19, [1, 0, 2] : vector<8x2x16xf32> -> vector<2x8x16xf32>
    %c0_13 = arith.constant 0 : index
    %c0_14 = arith.constant 0 : index
    %c0_15 = arith.constant 0 : index
    %c0_16 = arith.constant 0 : index
    %21 = vector.load %arg6[%c0_13, %c0_14, %c0_15, %c0_16] : memref<1x2x8x16xf32, #tpu.memory_space<vmem>>, vector<1x2x8x16xf32>
    %22 = vector.shape_cast %21 : vector<1x2x8x16xf32> to vector<2x8x16xf32>
    %23 = vector.shape_cast %20 : vector<2x8x16xf32> to vector<1x2x8x16xf32>
    tpu.vector_store %arg6[%c0_13, %c0_14, %c0_15, %c0_16], %23 {strides = array<i32>} : memref<1x2x8x16xf32, #tpu.memory_space<vmem>>, vector<1x2x8x16xf32>,
    return
  }
  func.func @transform_0(%arg0: i32, %arg1: i32) -> (i32, i32, i32) {
    %c0_i32 = arith.constant 0 : i32
    %c0_i32_0 = arith.constant 0 : i32
    return %arg0, %arg1, %c0_i32 : i32, i32, i32
  }
  func.func @transform_1(%arg0: i32, %arg1: i32) -> (i32, i32) {
    %c0_i32 = arith.constant 0 : i32
    %c0_i32_0 = arith.constant 0 : i32
    %c0_i32_1 = arith.constant 0 : i32
    return %c0_i32, %c0_i32_0 : i32, i32
  }
  func.func @transform_2(%arg0: i32, %arg1: i32) -> (i32, i32, i32, i32) {
    %c0_i32 = arith.constant 0 : i32
    %c0_i32_0 = arith.constant 0 : i32
    %c0_i32_1 = arith.constant 0 : i32
    return %arg0, %c0_i32, %arg1, %c0_i32_0 : i32, i32, i32, i32
  }
  func.func @transform_3(%arg0: i32, %arg1: i32) -> (i32, i32, i32, i32) {
    %c0_i32 = arith.constant 0 : i32
    %c0_i32_0 = arith.constant 0 : i32
    %c0_i32_1 = arith.constant 0 : i32
    return %arg0, %c0_i32, %c0_i32_0, %arg1 : i32, i32, i32, i32
  }
  func.func @transform_4(%arg0: i32, %arg1: i32) -> (i32, i32, i32, i32) {
    %c0_i32 = arith.constant 0 : i32
    %c0_i32_0 = arith.constant 0 : i32
    %c0_i32_1 = arith.constant 0 : i32
    return %arg0, %c0_i32, %arg1, %c0_i32_0 : i32, i32, i32, i32
  }
}

</mosaic_0001>

<bundles_post_ra>
// kernel: tpu_custom_call.1
= control target key start
LH: loop header
LB: loop body
LE: loop exit
PB: predicated region body
PF: predicated region fallthrough
CT: control target
= control target key end

     0   :  { %s1493_s0 = inlined_call_operand.hbm [shape: f32[2,8,32], index: 0, kind: input, shape index: {}]   ;;  %s1494_s1 = inlined_call_operand.hbm [shape: f32[32,96], index: 1, kind: input, shape index: {}]   ;;  %s1495_s2 = inlined_call_operand.hbm [shape: f32[2,2,8,16], index: 2, kind: output, shape index: {0}]   ;;  %s1496_s3 = inlined_call_operand.vmem [shape: f32[2,2,16,8], index: 3, kind: output, shape index: {1}]   ;;  %s1497_s4 = inlined_call_operand.hbm [shape: f32[2,2,8,16], index: 4, kind: output, shape index: {2}]  }
   0x1   :  { %1499 = sst [smem:[#allocation14_spill]] %s1494_s1 }
   0x2   :  { %10 = vsyncpa [#allocation3], 0 }
   0x3   :  { %12 = vsyncpa [#allocation3 + $0x1], 0 }
   0x4   :  { %13 = vsyncpa [#allocation6], 0 }
   0x5   :  { %14 = vsyncpa [#allocation4], 0 }
   0x6   :  { %16 = vsyncpa [#allocation4 + $0x1], 0 }
   0x7   :  { %17 = vsyncpa [#allocation9], 0 }
   0x8   :  { %19 = vsyncpa [#allocation9 + $0x1], 0  ;;  %s1205_s15 = smov 0   ;;  %s1207_s16 = smov 0  }
   0x9   :  { %s1209_s17 = smov 0   ;;  %s1211_s18 = smov 0  }
   0xa   :  { %s1213_s19 = smov 0   ;;  %s1215_s20 = smov 0  }
   0xb LB: > { %s860_s21 = sadd.s32 4294967295, %s1163_s20   ;;  %s861_s22 = sadd.s32 4294967294, %s1163_s20   ;;  %s1163_s20 = sphi %s1215_s20, %s25_s20   ;;  %s1159_s19 = sphi %s1213_s19, %s1517_s19   ;;  %s1155_s18 = sphi %s1211_s18, %s1516_s18   ;;  %s1151_s17 = sphi %s1209_s17, %s1515_s17   ;;  %s1147_s16 = sphi %s1207_s16, %s1514_s16   ;;  %s1143_s15 = sphi %s1205_s15, %s1513_s15  }
   0xc   : > { %p59_p0 = scmp.ne.s32.totalorder %s1147_s16, %s1143_s15  ;;  %p1239_p1 = scmp.eq.s32.totalorder %s860_s21, 0 }
   0xd   : > { %p1243_p2 = scmp.eq.s32.totalorder %s860_s21, 1  ;;  %p112_p3 = scmp.eq.s32.totalorder %s861_s22, 1 }
   0xe   : > { %p1249_p4 = por %p1239_p1, %p59_p0  ;;  %p862_p5 = scmp.ge.s32.totalorder %s1163_s20, 1 }
   0xf   : > { %p1254_p6 = por %p112_p3, %p59_p0  ;;  %p175_p7 = scmp.lt.s32.totalorder %s1163_s20, 3 }
  0x10   : > { %s1502_s25 = scalar_select %p1249_p4, 1, 0 }
  0x11   : > { %s1503_s26 = scalar_select %p1254_p6, 1, 0 }
  0x12   : > { %p1259_p8 = pnand %p862_p5, %p175_p7  ;;  %s1165_s28 = smov [#allocation5]  }
  0x13   : > { %s187_s29 = sshll.u32 %s1165_s28, 4  ;;  %s37_s5 = sadd.s32 1, %s1159_s19  ;;  %s188_s29 = int_to_ptr.vmem [resolvable:$true] %s187_s29 }
  0x14   : > { %p916_p9 = pneg %p1259_p8  ;;  %s1006_s6 = scalar_lea.vmem %s188_s29, 512 }
  0x15   : > { %p1007_p13 = scmp.ne.s32.totalorder %s188_s29, %s1006_s6  ;;  %p1014_p5 = scmp.lt.s32.totalorder %s188_s29, %s188_s29 }
  0x16   : > { %p1268_p11 = pnand %p916_p9, %p1239_p1  ;;  %p1015_p7 = scmp.lt.s32.totalorder %s1006_s6, %s1006_s6 }
  0x18   : > { %p997_p12 = pneg %p1268_p11  ;;  %p1016_p6 = por %p1015_p7, %p1014_p5 }
  0x1a   : > { %p1009_p0 = pnand %p1007_p13, %p997_p12 }
  0x1c   : > { %p1010_p3 = pneg %p1009_p0 }
  0x1e   : > { %p1017_p4 = pnand %p1016_p6, %p1010_p3 }
  0x20   : > { %1020 = shalt.err (!%p1017_p4)
}
  0x21   : > { %s1166_s7 = smov 128   ;;  %s1167_s8 = smov 8  }
  0x22   : > { %s1506_s1 = sld [smem:[#allocation14_spill]]  ;;  %p39_p6 = scmp.ge.s32.totalorder %s37_s5, 2 }
  0x23   : > { %s46_s11 = sadd.s32 1, %s1151_s17  ;;  %p53_p4 = scmp.ne.s32.totalorder %s1151_s17, %s1147_s16 }
  0x24   : > { %p54_p9 = scmp.eq.s32.totalorder %s1163_s20, 0  ;;  %s1519_s5 = smov (%p39_p6, %s37_s5), 0 }
  0x25   : > { %p1292_p13 = por %p1243_p2, %p53_p4  ;;  %s41_s14 = ssub.s32 %s1159_s19, %s1519_s5 }
  0x26   : > { %p1286_p12 = por %p54_p9, %p53_p4  ;;  %p932_p0 = scmp.lt.s32.totalorder %s1163_s20, 2 }
  0x27   : > { %s201_s21 = sand.u32 1, %s1151_s17  }
  0x28   : > { %919 = dma.hbm_to_vmem [thread:$0]  (!%p1268_p11), %s1506_s1, 512, %s188_s29, [#allocation6], %s1166_s7, %s1166_s7, %s1167_s8  }
  0x29   : > { %p44_p11 = scmp.eq.s32.totalorder %s41_s14, 0  ;;  %s865_s22 = sshll.u32 %s201_s21, 3 }
  0x2a   : > { %s866_s29 = sshll.u32 %s1159_s19, 7  ;;  %s205_s8 = scalar_lea.vmem [#allocation2], %s865_s22 }
  0x2b   : > { %s1301_s28 = scalar_select %p44_p11, %s1151_s17, %s46_s11  }
  0x2c   : > { %s211_s7 = scalar_lea.hbm %s1493_s0, %s866_s29  ;;  %s213_s9 = sshll.u32 %s205_s8, 4  ;;  %s214_s9 = int_to_ptr.vmem [resolvable:$true] %s213_s9 }
  0x2d   : > { %p1309_p2 = pnand %p932_p0, %p1286_p12  ;;  %s202_s10 = scalar_lea.sflag [#allocation3], %s201_s21 }
  0x2e   : > { %s1034_s14 = scalar_lea.vmem %s214_s9, 128  ;;  %s1168_s11 = smov [#allocation2]  }
  0x2f   : > { %p1023_p3 = pneg %p1309_p2  ;;  %p1035_p5 = scmp.ne.s32.totalorder %s214_s9, %s1034_s14 }
  0x30   : > { %s1039_s1 = sshll.u32 %s1168_s11, 4  ;;  %s1040_s1 = int_to_ptr.vmem [resolvable:$false] %s1039_s1 }
  0x31   : > { %p1037_p7 = pnand %p1035_p5, %p1023_p3  ;;  %s1041_s29 = scalar_lea.vmem %s1040_s1, 256 }
  0x32   : > { %p1042_p4 = scmp.lt.s32.totalorder %s214_s9, %s1040_s1  ;;  %p1043_p9 = scmp.lt.s32.totalorder %s1041_s29, %s1034_s14 }
  0x33   : > { %p1038_p6 = pneg %p1037_p7 }
  0x34   : > { %p1044_p11 = por %p1043_p9, %p1042_p4 }
  0x36   : > { %p1045_p10 = pnand %p1044_p11, %p1038_p6 }
  0x38   : > { %1048 = shalt.err (!%p1045_p10)
}
  0x39   : > { %923 = dma.hbm_to_vmem [thread:$0]  (!%p1309_p2), %s211_s7, 128, %s214_s9, %s202_s10  }
  0x3a   : > { %222 = sbr.rel (%p1259_p8) target bundleno = 535 (0x217), region = 28  ;;  %s1320_s12 = sand.u32 (!%p1259_p8), 1, %s1147_s16  }
  0x3b   : > { %s868_s21 = sshll.u32 (!%p1259_p8), %s1320_s12, 3  ;;  %s225_s22 = scalar_lea.sflag (!%p1259_p8), [#allocation3], %s1320_s12 }
  0x3c   : > { %s228_s30 = scalar_lea.vmem (!%p1259_p8), [#allocation2], %s868_s21  ;;  %p1510_p12 = scmp.ne.s32.totalorder (!%p1259_p8), %s1502_s25, 0 }
  0x3f   : > { %1126 = dma.done.wait (%p1510_p12), %s225_s22, 128  }
  0x40   : > { %1128 = vsyncadd (%p1510_p12), %s225_s22, 4294967168 }
  0x41   : > { %1130 = dma.done.wait (%p1239_p1), [#allocation6], 512  }
  0x42   : > { %1132 = vsyncadd (%p1239_p1), [#allocation6], 4294966784  ;;  %v1169_v0 = vmov 0.0   ;;  %vm1170_vm0 = vmmov 0   ;;  %v282_v1 = vld [vmem:[#allocation5 + $0x18] sm:$0xff]  ;;  %v281_v2 = vld [vmem:[#allocation5 + $0x10] sm:$0xff]  ;;  %v366_v11 = vlaneseq }
  0x43   : > { %895 = vmatprep.subr.mxu0 %v1169_v0  ;;  %903 = vmatprep.mubr.msk.f32.mxu0 %vm1170_vm0, %v1169_v0  ;;  %v280_v3 = vld [vmem:[#allocation5 + $0x8] sm:$0xff]  ;;  %v279_v4 = vld [vmem:[#allocation5] sm:$0xff]  ;;  %v278_v5 = vld [vmem:[%s228_s30] sm:$0xff]  ;;  %vm283_vm1 = vcmask 261120   ;;  %s1171_s1 = smov 64   ;;  %s1172_s23 = smov 112  }
  0x44   : > { %896 = vmatpush3.msra.mxu0 %v282_v1  ;;  %s1173_s25 = smov 96   ;;  %v1174_v9 = vmov 1983009808   ;;  %v367_v13 = vshrl.u32 %v366_v11, 7  ;;  %v1175_v14 = vmov 1934713408  }
  0x45   : > { %897 = vmatprep.subr.mxu0 %v1169_v0  ;;  %v364_v10 = vunpack.c.l.s4 %v1174_v9  ;;  %v395_v15 = vunpack.c.l.s4 %v1175_v14  ;;  %s870_s27 = sshll.u32 %s1320_s12, 4  ;;  %s888_s6 = sshll.u32 %s1155_s18, 8  ;;  %vm478_vm2 = vcmask 130048  }
  0x46   : > { %898 = vmatpush3.msra.mxu0 %v281_v2  ;;  %s252_s7 = scalar_lea.vmem [#allocation7], %s870_s27  ;;  %s1368_s10 = scalar_lea.hbm %s1495_s2, %s888_s6 }
  0x47   : > { %899 = vmatprep.subr.mxu0 %v1169_v0  ;;  %v365_v12 = vunpack.c.0.s8 %v364_v10  ;;  %v396_v19 = vunpack.c.0.s8 %v395_v15  ;;  %s676_s8 = sshll.u32 %s252_s7, 4  ;;  %s649_s14 = scalar_lea.sflag [#allocation4], %s1320_s12  ;;  %s1370_s8 = int_to_ptr.vmem [resolvable:$true] %s676_s8 }
  0x48   : > { %900 = vmatpush3.msra.mxu0 %v280_v3  ;;  %s1049_s11 = scalar_lea.vmem %s1370_s8, 256  ;;  %s1176_s29 = smov [#allocation7]  }
  0x49   : > { %901 = vmatprep.subr.mxu0 %v1169_v0  ;;  %v1339_v18 = vsub.s32 %v365_v12, %v367_v13  ;;  %v1342_v23 = vsub.s32 %v396_v19, %v367_v13  ;;  %p1050_p1 = scmp.ne.s32.totalorder %s1370_s8, %s1049_s11  ;;  %s1053_s21 = sshll.u32 %s1176_s29, 4  ;;  %s1054_s21 = int_to_ptr.vmem [resolvable:$false] %s1053_s21 }
  0x4a   : > { %902 = vmatpush3.msra.mxu0 %v279_v4  ;;  %s1055_s22 = scalar_lea.vmem %s1054_s21, 512  ;;  %p1056_p0 = scmp.lt.s32.totalorder %s1370_s8, %s1054_s21 }
  0x4b   : > { %904 = vmatmul.mubr.msk.f32.vlgmr.msra.gmra.mxu0 %vm283_vm1, %v278_v5  ;;  %p1051_p8 = pnand %p1050_p1, %p1292_p13  ;;  %p1057_p2 = scmp.lt.s32.totalorder %s1055_s22, %s1049_s11 }
  0x4d   : > { %p1052_p10 = pneg %p1051_p8  ;;  %p1058_p3 = por %p1057_p2, %p1056_p0 }
  0x4f   : > { %p1059_p5 = pnand %p1058_p3, %p1052_p10 }
 0x10b   : > { %v353_v6 = vpop.f32.mrf.mxu0 }
 0x10c   : > { %524 = vrot.lane.b32.xlu1 %v353_v6, %s1171_s1  ;;  %522 = vrot.lane.b32.xlu0 %v353_v6, %s1172_s23  ;;  %v357_v8 = vmul.f32 0.25, %v353_v6 }
 0x10d   : > { %v905_v7 = vpop.f32.mrf.mxu0 }
 0x10e   : > { %v362_v20 = vcombine.high %v357_v8, %v1169_v0  ;;  %v369_v24 = vrot.slane %v357_v8, %v1339_v18 }
 0x110   : > { %482 = vrot.lane.b32.xlu0 %v353_v6, %s1173_s25  ;;  %359 = vrot.lane.b32.xlu1 %v357_v8, %s1172_s23  ;;  %v376_v27 = vrot.slane %v362_v20, %v1339_v18 }
 0x17e   : > { %v1337_v16 = vpop.permute.xlu1 %524  ;;  %v523_v17 = vpop.permute.xlu0 %522 }
 0x17f   : > { %526 = vrot.lane.b32.xlu0 %v523_v17, %s1171_s1 }
 0x182   : > { %v483_v21 = vpop.permute.xlu0 %482  ;;  %v360_v22 = vpop.permute.xlu1 %359 }
 0x183   : > { %v377_v25 = vcombine.high %v360_v22, %v1169_v0  ;;  %v384_v26 = vrot.slane %v360_v22, %v1339_v18  ;;  %485 = vxpose.xlu1.b32.start.end [1/1] (short) (narrow) %v483_v21, 32 }
 0x185   : > { %v391_v28 = vrot.slane %v377_v25, %v1339_v18  ;;  %v392_v29 = vcombine.low %v369_v24, %v384_v26  ;;  %v393_v30 = vcombine.high %v369_v24, %v384_v26 }
 0x187   : > { %v400_v31 = vrot.slane %v392_v29, %v1342_v23  ;;  %v407_v32 = vrot.slane %v393_v30, %v1342_v23  ;;  %v408_v33 = vcombine.low %v376_v27, %v391_v28  ;;  %v409_v34 = vcombine.high %v376_v27, %v391_v28 }
 0x189   : > { %v416_v35 = vrot.slane %v408_v33, %v1342_v23  ;;  %v423_v36 = vrot.slane %v409_v34, %v1342_v23  ;;  %v428_v37 = vcombine.low %v400_v31, %v407_v32  ;;  %v875_v38 = vcombine.high %v400_v31, %v407_v32 }
 0x18b   : > { %v435_v39 = vrot.slane %v428_v37, %v1339_v18  ;;  %v443_v40 = vrot.slane %v875_v38, %v1339_v18  ;;  %v444_v41 = vcombine.low %v416_v35, %v423_v36  ;;  %v876_v42 = vcombine.high %v416_v35, %v423_v36 }
 0x18d   : > { %v451_v43 = vrot.slane %v444_v41, %v1339_v18  ;;  %v459_v44 = vrot.slane %v876_v42, %v1339_v18  ;;  %v460_v45 = vcombine.low %v435_v39, %v443_v40 }
 0x18f   : > { %v468_v46 = vcombine.low %v451_v43, %v459_v44  ;;  %v467_v47 = vrot.slane %v460_v45, %v1342_v23 }
 0x191   : > { %v475_v48 = vrot.slane %v468_v46, %v1342_v23 }
 0x193   : > { %v476_v49 = vcombine.low %v467_v47, %v475_v48  ;;  %v477_v50 = vcombine.high %v467_v47, %v475_v48 }
 0x195   : > { %479 = vst.msk [vmem:[%s252_s7] sm:$0xff] %vm478_vm2, %v476_v49  ;;  %480 = vst.msk [vmem:[%s252_s7 + $0x8] sm:$0xff] %vm478_vm2, %v477_v50 }
 0x196   : > { %1062 = shalt.err (!%p1059_p5)
}
 0x197   : > { %s1063_s30 = scalar_lea.hbm %s1368_s10, 256  ;;  %s1067_s25 = scalar_lea.hbm %s1495_s2, 512 }
 0x198   : > { %p1064_p7 = scmp.ne.s32.totalorder %s1368_s10, %s1063_s30  ;;  %p1068_p9 = scmp.lt.s32.totalorder %s1368_s10, %s1495_s2 }
 0x199   : > { %p1069_p11 = scmp.lt.s32.totalorder %s1067_s25, %s1063_s30 }
 0x19a   : > { %p1065_p6 = pnand %p1064_p7, %p1292_p13 }
 0x19b   : > { %p1070_p12 = por %p1069_p11, %p1068_p9 }
 0x19c   : > { %p1066_p4 = pneg %p1065_p6 }
 0x19e   : > { %p1071_p1 = pnand %p1070_p12, %p1066_p4 }
 0x1a0   : > { %1074 = shalt.err (!%p1071_p1)
}
 0x1a1   : > { %s1177_s24 = smov 128   ;;  %s1178_s11 = smov 8   ;;  %v530_v51 = vcombine.high %v1337_v16, %v1169_v0  ;;  %v537_v53 = vrot.slane %v1337_v16, %v1339_v18  ;;  %vm517_vm3 = vcmask 64512  }
 0x1a2   : > { %912 = dma.vmem_to_hbm [thread:$0]  (%p1292_p13), %s1370_s8, 256, %s1368_s10, %s649_s14, %s1177_s24, %s1177_s24, %s1178_s11  }
 0x1a3   : > { %p270_p8 = scmp.lt.s32.totalorder %s1155_s18, 1  ;;  %v544_v56 = vrot.slane %v530_v51, %v1339_v18  ;;  %s269_s22 = scalar_lea.vmem [#allocation8], %s870_s27 }
 0x1a4   : > { %s696_s30 = sshll.u32 %s269_s22, 4  ;;  %s1434_s25 = scalar_lea.hbm %s1497_s4, %s888_s6  ;;  %s1436_s30 = int_to_ptr.vmem [resolvable:$true] %s696_s30 }
 0x1a5   : > { %s271_s8 = scalar_select %p270_p8, %s1155_s18, 1 }
 0x1a6   : > { %s662_s27 = scalar_lea.sflag [#allocation9], %s1320_s12  ;;  %s1075_s7 = scalar_lea.vmem %s1436_s30, 256 }
 0x1a7   : > { %s887_s10 = sshll.u32 %s271_s8, 5  ;;  %p1076_p10 = scmp.ne.s32.totalorder %s1436_s30, %s1075_s7 }
 0x1a8   : > { %s1421_s21 = scalar_lea.vmem %s1496_s3, %s887_s10  ;;  %s1179_s18 = smov [#allocation8]  }
 0x1a9   : > { %p1077_p0 = pnand %p1076_p10, %p1292_p13  ;;  %s1079_s6 = sshll.u32 %s1179_s18, 4  ;;  %s1080_s6 = int_to_ptr.vmem [resolvable:$false] %s1079_s6 }
 0x1aa   : > { %s1081_s9 = scalar_lea.vmem %s1080_s6, 512  ;;  %p1082_p3 = scmp.lt.s32.totalorder %s1436_s30, %s1080_s6 }
 0x1ab   : > { %p1078_p2 = pneg %p1077_p0  ;;  %p1083_p5 = scmp.lt.s32.totalorder %s1081_s9, %s1075_s7 }
 0x1ad   : > { %p1084_p7 = por %p1083_p5, %p1082_p3 }
 0x1af   : > { %p1085_p6 = pnand %p1084_p7, %p1078_p2 }
 0x1f1   : > { %v527_v52 = vpop.permute.xlu0 %526 }
 0x1f2   : > { %v545_v54 = vcombine.high %v527_v52, %v1169_v0  ;;  %v552_v55 = vrot.slane %v527_v52, %v1339_v18 }
 0x1f4   : > { %v559_v57 = vrot.slane %v545_v54, %v1339_v18  ;;  %v560_v58 = vcombine.low %v537_v53, %v552_v55  ;;  %v561_v59 = vcombine.high %v537_v53, %v552_v55 }
 0x1f6   : > { %v568_v60 = vrot.slane %v560_v58, %v1342_v23  ;;  %v575_v61 = vrot.slane %v561_v59, %v1342_v23  ;;  %v576_v62 = vcombine.low %v544_v56, %v559_v57  ;;  %v577_v63 = vcombine.high %v544_v56, %v559_v57 }
 0x1f8   : > { %v584_v1 = vrot.slane %v576_v62, %v1342_v23  ;;  %v591_v0 = vrot.slane %v577_v63, %v1342_v23  ;;  %v596_v2 = vcombine.low %v568_v60, %v575_v61  ;;  %v877_v3 = vcombine.high %v568_v60, %v575_v61 }
 0x1fa   : > { %v603_v4 = vrot.slane %v596_v2, %v1339_v18  ;;  %v611_v5 = vrot.slane %v877_v3, %v1339_v18  ;;  %v612_v6 = vcombine.low %v584_v1, %v591_v0  ;;  %v878_v7 = vcombine.high %v584_v1, %v591_v0 }
 0x1fc   : > { %v619_v8 = vrot.slane %v612_v6, %v1339_v18  ;;  %v627_v9 = vrot.slane %v878_v7, %v1339_v18  ;;  %v628_v10 = vcombine.low %v603_v4, %v611_v5 }
 0x1fe   : > { %v636_v11 = vcombine.low %v619_v8, %v627_v9  ;;  %v635_v13 = vrot.slane %v628_v10, %v1342_v23 }
 0x1ff   : > { %v501_v12 = vpop.trf.xlu1 }
 0x200   : > { %v643_v14 = vrot.slane %v636_v11, %v1342_v23  ;;  %518 = vst.msk [vmem:[%s1421_s21] sm:$0xff] %vm517_vm3, %v501_v12 }
 0x202   : > { %v644_v15 = vcombine.low %v635_v13, %v643_v14  ;;  %v645_v16 = vcombine.high %v635_v13, %v643_v14 }
 0x203   : > { %v502_v17 = vpop.trf.xlu1 }
 0x204   : > { %519 = vst.msk [vmem:[%s1421_s21 + $0x8] sm:$0xff] %vm517_vm3, %v502_v17 }
 0x205   : > { %646 = vst.msk [vmem:[%s269_s22] sm:$0xff] %vm478_vm2, %v644_v15  ;;  %647 = vst.msk [vmem:[%s269_s22 + $0x8] sm:$0xff] %vm478_vm2, %v645_v16 }
 0x206   : > { %1088 = shalt.err (!%p1085_p6)
}
 0x207   : > { %s1089_s8 = scalar_lea.hbm %s1434_s25, 256  ;;  %s1093_s14 = scalar_lea.hbm %s1497_s4, 512 }
 0x208   : > { %p1090_p4 = scmp.ne.s32.totalorder %s1434_s25, %s1089_s8  ;;  %p1094_p12 = scmp.lt.s32.totalorder %s1434_s25, %s1497_s4 }
 0x209   : > { %p1095_p1 = scmp.lt.s32.totalorder %s1093_s14, %s1089_s8 }
 0x20a   : > { %p1091_p9 = pnand %p1090_p4, %p1292_p13 }
 0x20b   : > { %p1096_p8 = por %p1095_p1, %p1094_p12 }
 0x20c   : > { %p1092_p11 = pneg %p1091_p9 }
 0x20e   : > { %p1097_p10 = pnand %p1096_p8, %p1092_p11 }
 0x210   : > { %1100 = shalt.err (!%p1097_p10)
}
 0x211   : > { %913 = dma.vmem_to_hbm [thread:$0]  (%p1292_p13), %s1436_s30, 256, %s1434_s25, %s662_s27, %s1177_s24, %s1177_s24, %s1178_s11   ;;  %v503_v18 = vpop.trf.xlu1 }
 0x212   : > { %520 = vst.msk [vmem:[%s1421_s21 + $0x10] sm:$0xff] %vm517_vm3, %v503_v18 }
 0x215   : > { %v504_v19 = vpop.trf.xlu1 }
 0x216   : > { %521 = vst.msk [vmem:[%s1421_s21 + $0x18] sm:$0xff] %vm517_vm3, %v504_v19 }
 0x217 PF: > { %s711_s1 = sand.u32 1, %s1143_s15   ;;  %p1511_p0 = scmp.ne.s32.totalorder %s1503_s26, 0 }
 0x218   : > { %p1512_p2 = scmp.ge.s32.totalorder %s1163_s20, 2  ;;  %s712_s13 = scalar_lea.sflag [#allocation4], %s711_s1 }
 0x21a   : > { %p925_p3 = pnand %p1512_p2, %p1511_p0 }
 0x21c   : > { %p926_p5 = pneg %p925_p3 }
 0x21e   : > { %1134 = dma.done.wait (%p926_p5), %s712_s13, 256  }
 0x21f   : > { %1136 = vsyncadd (%p926_p5), %s712_s13, 4294967040  ;;  %s732_s23 = scalar_lea.sflag [#allocation9], %s711_s1 }
 0x220   : > { %1138 = dma.done.wait (%p926_p5), %s732_s23, 256  }
 0x221   : > { %1140 = vsyncadd (%p926_p5), %s732_s23, 4294967040  ;;  %s25_s20 = sadd.s32 1, %s1163_s20   ;;  %s1513_s15 = smov %s1147_s16 }
 0x222   : > { %p22_p13 = scmp.ge.s32.totalorder %s25_s20, 4   ;;  %s1514_s16 = smov %s1151_s17 }
 0x223   : > { %s1515_s17 = smov %s1301_s28  ;;  %s1516_s18 = smov %s1159_s19 }
 0x224   : > { %s1517_s19 = smov %s1519_s5  ;;  %24 = sbr.rel (!%p22_p13) target bundleno = 11 (0xb), region = 106 }
 0x229   :  { %737 = vsyncpa [#allocation3], 1 }
 0x22a   :  { %739 = vsyncpa [#allocation3 + $0x1], 1 }
 0x22b   :  { %740 = vsyncpa [#allocation6], 1 }
 0x22c   :  { %741 = vsyncpa [#allocation4], 1 }
 0x22d   :  { %743 = vsyncpa [#allocation4 + $0x1], 1 }
 0x22e   :  { %744 = vsyncpa [#allocation9], 1 }
 0x22f   :  { %746 = vsyncpa [#allocation9 + $0x1], 1 }

</bundles_post_ra>
